<compile_context>
chip_gen: v5e
topology: v5e:2x2
jax: 0.10.0
libtpu: 0.0.40
codegen_flags: <defaults>
</compile_context>

<pallas_src>
import jax
import jax.numpy as jnp
from jax.experimental import pallas as pl
from jax.experimental.pallas import tpu as pltpu


def _round_up(n, m):
    return ((n + m - 1) // m) * m


def _mlp_kernel(x_ref, w1_ref, b1_ref, w2_ref, b2_ref, o_ref):
    """One batch tile of: relu(x @ w1.T + b1) @ w2.T + b2 (weights in (out, in) layout)."""
    cdt = w1_ref.dtype                      # MXU compute dtype (bf16 or f32)
    x = x_ref[...].astype(cdt)

    # fc1: (TB, I) x (Hp, I) -> (TB, Hp), contract feature axes, f32 accumulation.
    h = jax.lax.dot_general(
        x, w1_ref[...],
        dimension_numbers=(((1,), (1,)), ((), ())),
        preferred_element_type=jnp.float32)
    # Bias add + ReLU in f32 on the VPU (bias kept as a (1, Hp) row; single add per tile).
    h = jnp.maximum(h + b1_ref[...], 0.0)

    # out: (TB, Hp) x (Op, Hp) -> (TB, Op), f32 accumulation.
    y = jax.lax.dot_general(
        h.astype(cdt), w2_ref[...],
        dimension_numbers=(((1,), (1,)), ((), ())),
        preferred_element_type=jnp.float32)
    o_ref[...] = (y + b2_ref[...]).astype(o_ref.dtype)


def prepare_params(w1, b1, w2, b2, *, compute_dtype=jnp.bfloat16, lane=128):
    """One-time parameter prep (NOT in the per-call hot path).

    Pads hidden and output feature dims to multiples of `lane` (zero padding,
    mathematically inert) and casts weights to the MXU compute dtype.
    Biases stay f32 as (1, dim) rows (added after the matmul in f32).
    Returns (w1p, b1p, w2p, b2p, output_size).
    """
    hidden, in_dim = w1.shape
    out_dim, _ = w2.shape
    hp = _round_up(hidden, lane)
    op = _round_up(out_dim, lane)

    w1p = jnp.zeros((hp, in_dim), compute_dtype).at[:hidden, :].set(w1.astype(compute_dtype))
    b1p = jnp.zeros((1, hp), jnp.float32).at[:, :hidden].set(b1.astype(jnp.float32))
    w2p = jnp.zeros((op, hp), compute_dtype).at[:out_dim, :hidden].set(w2.astype(compute_dtype))
    b2p = jnp.zeros((1, op), jnp.float32).at[:, :out_dim].set(b2.astype(jnp.float32))
    return w1p, b1p, w2p, b2p, out_dim


def nn_forward(x, w1p, b1p, w2p, b2p, out_dim, *, max_block_batch=256):
    """Forward pass of NN using prepared (padded, cast) parameters.

    Args:
      x: (batch, input_size) float32
      w1p/b1p/w2p/b2p: output of prepare_params
      out_dim: true (unpadded) output_size
    Returns:
      (batch, output_size) float32
    """
    batch, in_dim = x.shape
    hp = w1p.shape[0]
    op = w2p.shape[0]

    # Batch tile: full batch if small, else 256-row blocks (multiple of 8/128).
    tb = batch if batch <= max_block_batch else max_block_batch
    grid = (pl.cdiv(batch, tb),)

    itemsize_w = jnp.dtype(w1p.dtype).itemsize
    flops = 2 * batch * in_dim * hp + 2 * batch * hp * op
    bytes_accessed = (
        x.size * 4
        + (w1p.size + w2p.size) * itemsize_w
        + (b1p.size + b2p.size) * 4
        + batch * op * 4
    )

    out_padded = pl.pallas_call(
        _mlp_kernel,
        out_shape=jax.ShapeDtypeStruct((batch, op), jnp.float32),
        grid=grid,
        in_specs=[
            pl.BlockSpec((tb, in_dim), lambda i: (i, 0)),   # x: tiled over batch
            pl.BlockSpec((hp, in_dim), lambda i: (0, 0)),   # w1: resident across grid
            pl.BlockSpec((1, hp), lambda i: (0, 0)),        # b1: resident
            pl.BlockSpec((op, hp), lambda i: (0, 0)),       # w2: resident
            pl.BlockSpec((1, op), lambda i: (0, 0)),        # b2: resident
        ],
        out_specs=pl.BlockSpec((tb, op), lambda i: (i, 0)), # lane-dense (op % 128 == 0)
        compiler_params=pltpu.CompilerParams(
            dimension_semantics=("parallel",)),             # v7x: shard batch over 2 TCs
        cost_estimate=pl.CostEstimate(
            flops=flops, transcendentals=0, bytes_accessed=bytes_accessed),
    )(x, w1p, b1p, w2p, b2p)

    # Slice away the output-feature padding (cheap, outside the kernel).
    return out_padded[:, :out_dim]


def init_params(key, input_size, hidden_size, output_size):
    """Deterministic init mimicking PyTorch nn.Linear default (uniform +/- 1/sqrt(fan_in))."""
    k1, k2, k3, k4 = jax.random.split(key, 4)
    bound1 = 1.0 / (input_size ** 0.5)
    bound2 = 1.0 / (hidden_size ** 0.5)
    w1 = jax.random.uniform(k1, (hidden_size, input_size), jnp.float32, -bound1, bound1)
    b1 = jax.random.uniform(k2, (hidden_size,), jnp.float32, -bound1, bound1)
    w2 = jax.random.uniform(k3, (output_size, hidden_size), jnp.float32, -bound2, bound2)
    b2 = jax.random.uniform(k4, (output_size,), jnp.float32, -bound2, bound2)
    return w1, b1, w2, b2


if __name__ == "__main__":
    # Small shapes consistent with an MLP classifier: batch=8, input=64, hidden=32, output=10.
    batch, input_size, hidden_size, output_size = 8, 64, 32, 10

    key = jax.random.PRNGKey(0)
    kx, kp = jax.random.split(key)
    x = jax.random.normal(kx, (batch, input_size), dtype=jnp.float32)
    w1, b1, w2, b2 = init_params(kp, input_size, hidden_size, output_size)

    # Pure-f32 reference (same math as the PyTorch module), highest precision.
    h_ref = jnp.maximum(
        jax.lax.dot_general(x, w1, (((1,), (1,)), ((), ())),
                            precision=jax.lax.Precision.HIGHEST) + b1, 0.0)
    y_ref = jax.lax.dot_general(h_ref, w2, (((1,), (1,)), ((), ())),
                                precision=jax.lax.Precision.HIGHEST) + b2

    # Default fast path: bf16 matmuls with f32 accumulation.
    p_bf16 = prepare_params(w1, b1, w2, b2, compute_dtype=jnp.bfloat16)
    y_bf16 = jax.block_until_ready(nn_forward(x, *p_bf16))
    assert y_bf16.shape == (batch, output_size)
    assert jnp.allclose(y_bf16, y_ref, atol=3e-2, rtol=3e-2)

    # Strict-parity path: pure f32 end to end (flag for exact PyTorch-f32 matching).
    p_f32 = prepare_params(w1, b1, w2, b2, compute_dtype=jnp.float32)
    y_f32 = jax.block_until_ready(nn_forward(x, *p_f32))
    assert y_f32.shape == (batch, output_size)
    assert jnp.allclose(y_f32, y_ref, atol=1e-4, rtol=1e-4)

    print("KERNEL_OK")
</pallas_src>

<mosaic_0001>
module attributes {stable_mosaic.version = 11 : i64} {
  func.func @_mlp_kernel(%arg0: i32, %arg1: memref<8x64xf32, #tpu.memory_space<vmem>>, %arg2: memref<128x64xbf16, #tpu.memory_space<vmem>>, %arg3: memref<1x128xf32, #tpu.memory_space<vmem>>, %arg4: memref<128x128xbf16, #tpu.memory_space<vmem>>, %arg5: memref<1x128xf32, #tpu.memory_space<vmem>>, %arg6: memref<8x128xf32, #tpu.memory_space<vmem>>) attributes {dimension_semantics = [#tpu.dimension_semantics<parallel>], iteration_bounds = array<i64: 1>, scalar_prefetch = 0 : i64, scratch_operands = 0 : i64, tpu.core_type = #tpu.core_type<tc>, window_params = [{transform_indices = @transform_0, window_bounds = array<i64: 8, 64>}, {pipeline_mode = #tpu.pipeline_mode<synchronous>, transform_indices = @transform_1, window_bounds = array<i64: 128, 64>}, {pipeline_mode = #tpu.pipeline_mode<synchronous>, transform_indices = @transform_2, window_bounds = array<i64: 1, 128>}, {pipeline_mode = #tpu.pipeline_mode<synchronous>, transform_indices = @transform_3, window_bounds = array<i64: 128, 128>}, {pipeline_mode = #tpu.pipeline_mode<synchronous>, transform_indices = @transform_4, window_bounds = array<i64: 1, 128>}, {transform_indices = @transform_5, window_bounds = array<i64: 8, 128>}]} {
    %c0 = arith.constant 0 : index
    %c0_0 = arith.constant 0 : index
    %0 = vector.load %arg1[%c0, %c0_0] : memref<8x64xf32, #tpu.memory_space<vmem>>, vector<8x64xf32>
    %1 = arith.truncf %0 : vector<8x64xf32> to vector<8x64xbf16>
    %c0_1 = arith.constant 0 : index
    %c0_2 = arith.constant 0 : index
    %2 = vector.load %arg2[%c0_1, %c0_2] : memref<128x64xbf16, #tpu.memory_space<vmem>>, vector<128x64xbf16>
    %cst = arith.constant dense<0.000000e+00> : vector<8x128xf32>
    %3 = tpu.matmul %1, %2, %cst {dimension_numbers = #tpu.dot_dimension_numbers<[1], [1], [0], [0], [0, 0, 1, 0], [], []>} : vector<8x64xbf16>, vector<128x64xbf16>, vector<8x128xf32> -> vector<8x128xf32>
    %c0_3 = arith.constant 0 : index
    %c0_4 = arith.constant 0 : index
    %4 = vector.load %arg3[%c0_3, %c0_4] : memref<1x128xf32, #tpu.memory_space<vmem>>, vector<1x128xf32>
    %5 = vector.broadcast %4 : vector<1x128xf32> to vector<8x128xf32>
    %6 = arith.addf %3, %5 : vector<8x128xf32>
    %cst_5 = arith.constant 0.000000e+00 : f32
    %7 = vector.broadcast %cst_5 : f32 to vector<8x128xf32>
    %8 = arith.maximumf %6, %7 : vector<8x128xf32>
    %9 = arith.truncf %8 : vector<8x128xf32> to vector<8x128xbf16>
    %c0_6 = arith.constant 0 : index
    %c0_7 = arith.constant 0 : index
    %10 = vector.load %arg4[%c0_6, %c0_7] : memref<128x128xbf16, #tpu.memory_space<vmem>>, vector<128x128xbf16>
    %cst_8 = arith.constant dense<0.000000e+00> : vector<8x128xf32>
    %11 = tpu.matmul %9, %10, %cst_8 {dimension_numbers = #tpu.dot_dimension_numbers<[1], [1], [0], [0], [0, 0, 1, 0], [], []>} : vector<8x128xbf16>, vector<128x128xbf16>, vector<8x128xf32> -> vector<8x128xf32>
    %c0_9 = arith.constant 0 : index
    %c0_10 = arith.constant 0 : index
    %12 = vector.load %arg5[%c0_9, %c0_10] : memref<1x128xf32, #tpu.memory_space<vmem>>, vector<1x128xf32>
    %13 = vector.broadcast %12 : vector<1x128xf32> to vector<8x128xf32>
    %14 = arith.addf %11, %13 : vector<8x128xf32>
    %c0_11 = arith.constant 0 : index
    %c0_12 = arith.constant 0 : index
    %15 = vector.load %arg6[%c0_11, %c0_12] : memref<8x128xf32, #tpu.memory_space<vmem>>, vector<8x128xf32>
    tpu.vector_store %arg6[%c0_11, %c0_12], %14 {strides = array<i32>} : memref<8x128xf32, #tpu.memory_space<vmem>>, vector<8x128xf32>,
    return
  }
  func.func @transform_0(%arg0: i32) -> (i32, i32) {
    %c0_i32 = arith.constant 0 : i32
    %c0_i32_0 = arith.constant 0 : i32
    return %arg0, %c0_i32 : i32, i32
  }
  func.func @transform_1(%arg0: i32) -> (i32, i32) {
    %c0_i32 = arith.constant 0 : i32
    %c0_i32_0 = arith.constant 0 : i32
    %c0_i32_1 = arith.constant 0 : i32
    return %c0_i32, %c0_i32_0 : i32, i32
  }
  func.func @transform_2(%arg0: i32) -> (i32, i32) {
    %c0_i32 = arith.constant 0 : i32
    %c0_i32_0 = arith.constant 0 : i32
    %c0_i32_1 = arith.constant 0 : i32
    return %c0_i32, %c0_i32_0 : i32, i32
  }
  func.func @transform_3(%arg0: i32) -> (i32, i32) {
    %c0_i32 = arith.constant 0 : i32
    %c0_i32_0 = arith.constant 0 : i32
    %c0_i32_1 = arith.constant 0 : i32
    return %c0_i32, %c0_i32_0 : i32, i32
  }
  func.func @transform_4(%arg0: i32) -> (i32, i32) {
    %c0_i32 = arith.constant 0 : i32
    %c0_i32_0 = arith.constant 0 : i32
    %c0_i32_1 = arith.constant 0 : i32
    return %c0_i32, %c0_i32_0 : i32, i32
  }
  func.func @transform_5(%arg0: i32) -> (i32, i32) {
    %c0_i32 = arith.constant 0 : i32
    %c0_i32_0 = arith.constant 0 : i32
    return %arg0, %c0_i32 : i32, i32
  }
}

</mosaic_0001>

<bundles_post_ra>
// kernel: tpu_custom_call.1
= control target key start
LH: loop header
LB: loop body
LE: loop exit
PB: predicated region body
PF: predicated region fallthrough
CT: control target
= control target key end

     0   :  { %vm83_vm0 = vcmask 523264   ;;  %s434_s0 = inlined_call_operand.vmem [shape: f32[8,64], index: 0, kind: input, shape index: {}]   ;;  %s435_s1 = inlined_call_operand.vmem [shape: bf16[128,64], index: 1, kind: input, shape index: {}]   ;;  %s436_s2 = inlined_call_operand.vmem [shape: f32[1,128], index: 2, kind: input, shape index: {}]   ;;  %s437_s3 = inlined_call_operand.vmem [shape: bf16[128,128], index: 3, kind: input, shape index: {}]   ;;  %s438_s4 = inlined_call_operand.vmem [shape: f32[1,128], index: 4, kind: input, shape index: {}]   ;;  %s439_s5 = inlined_call_operand.hbm [shape: f32[8,128], index: 5, kind: output, shape index: {}]  }
   0x1   :  { %v296_v0 = vld [vmem:[%s435_s1 + $0x38] sm:$0xff] }
   0x2   :  { %v109_v1 = vsel %vm83_vm0, %v296_v0, 0 }
   0x3   :  { %111 = vmatpush.bf16.xpose.msra.mxu0 %v109_v1 }
   0x4   :  { %10 = vsyncpa [#allocation3], 0  ;;  %v295_v2 = vld [vmem:[%s435_s1 + $0x30] sm:$0xff]  ;;  %v294_v4 = vld [vmem:[%s435_s1 + $0x28] sm:$0xff]  ;;  %s334_s29 = smov [#allocation2]  }
   0x5   :  { %v106_v3 = vsel %vm83_vm0, %v295_v2, 0  ;;  %v103_v5 = vsel %vm83_vm0, %v294_v4, 0  ;;  %v293_v6 = vld [vmem:[%s435_s1 + $0x20] sm:$0xff]  ;;  %v292_v8 = vld [vmem:[%s435_s1 + $0x18] sm:$0xff]  ;;  %v291_v11 = vld [vmem:[%s435_s1 + $0x10] sm:$0xff]  ;;  %s213_s30 = sshll.u32 %s334_s29, 4  ;;  %s214_s30 = int_to_ptr.vmem [resolvable:$true] %s213_s30 }
   0x6   :  { %v100_v7 = vsel %vm83_vm0, %v293_v6, 0  ;;  %v97_v9 = vsel %vm83_vm0, %v292_v8, 0  ;;  %v304_v10 = vld [vmem:[%s437_s3 + $0x38] sm:$0xff]  ;;  %v94_v12 = vsel %vm83_vm0, %v291_v11, 0  ;;  %v303_v13 = vld [vmem:[%s437_s3 + $0x30] sm:$0xff]  ;;  %v290_v14 = vld [vmem:[%s435_s1 + $0x8] sm:$0xff] }
   0x7   :  { %194 = vmatpush.bf16.xpose.msra.mxu1 %v304_v10  ;;  %v91_v15 = vsel %vm83_vm0, %v290_v14, 0  ;;  %v302_v16 = vld [vmem:[%s437_s3 + $0x28] sm:$0xff]  ;;  %v289_v17 = vld [vmem:[%s435_s1] sm:$0xff]  ;;  %v300_v22 = vld [vmem:[%s437_s3 + $0x18] sm:$0xff] }
   0x8   :  { %v88_v18 = vsel %vm83_vm0, %v289_v17, 0  ;;  %v301_v19 = vld [vmem:[%s437_s3 + $0x20] sm:$0xff]  ;;  %v299_v23 = vld [vmem:[%s437_s3 + $0x10] sm:$0xff]  ;;  %v298_v24 = vld [vmem:[%s437_s3 + $0x8] sm:$0xff] }
   0x9   :  { %v21_v20 = vld [vmem:[%s434_s0] sm:$0xff] }
   0xa   :  { %v22_v21 = vpack.c.bf16 %v21_v20, %v21_v20  ;;  %v297_v25 = vld [vmem:[%s437_s3] sm:$0xff]  ;;  %s215_s3 = sshll.u32 %s439_s5, 4  ;;  %s216_s3 = int_to_ptr.hbm [resolvable:$true] %s215_s3 }
   0xb   :  { %112 = vmatpush.bf16.xpose.msra.mxu0 %v106_v3  ;;  %v306_v26 = vld [vmem:[%s436_s2] ss:$0 sm:$0xff] }
   0xc   :  { %v307_v32 = vld [vmem:[%s438_s4] ss:$0 sm:$0xff] }
   0xf   :  { %195 = vmatpush.bf16.xpose.msra.mxu1 %v303_v13 }
  0x13   :  { %113 = vmatpush.bf16.xpose.msra.mxu0 %v103_v5 }
  0x17   :  { %196 = vmatpush.bf16.xpose.msra.mxu1 %v302_v16 }
  0x1b   :  { %114 = vmatpush.bf16.xpose.msra.mxu0 %v100_v7 }
  0x1f   :  { %197 = vmatpush.bf16.xpose.msra.mxu1 %v301_v19 }
  0x23   :  { %115 = vmatpush.bf16.xpose.msra.mxu0 %v97_v9 }
  0x27   :  { %198 = vmatpush.bf16.xpose.msra.mxu1 %v300_v22 }
  0x2b   :  { %116 = vmatpush.bf16.xpose.msra.mxu0 %v94_v12 }
  0x2f   :  { %199 = vmatpush.bf16.xpose.msra.mxu1 %v299_v23 }
  0x33   :  { %117 = vmatpush.bf16.xpose.msra.mxu0 %v91_v15 }
  0x37   :  { %200 = vmatpush.bf16.xpose.msra.mxu1 %v298_v24 }
  0x3b   :  { %118 = vmatpush.bf16.xpose.msra.mxu0 %v88_v18 }
  0x3f   :  { %201 = vmatpush.bf16.xpose.msra.mxu1 %v297_v25 }
  0x42   :  { %256 = vmatmul.msk.bf16.vlgmr.msra.gmra.mxu0 %vm83_vm0, %v22_v21 }
  0xbf   :  { %v120_v27 = vpop.f32.mrf.mxu0 }
  0xc0   :  { %v121_v28 = vadd.f32 %v306_v26, %v120_v27 }
  0xc2   :  { %v124_v29 = vmax.f32 %v121_v28, 0.0 }
  0xc4   :  { %v125_v30 = vpack.c.bf16 %v124_v29, %v124_v29 }
  0xc6   :  { %202 = vmatmul.bf16.vlgmr.msra.gmra.mxu1 %v125_v30 }
  0xc7   :  { %v122_v31 = vpop.f32.mrf.mxu0 }
 0x143   :  { %v203_v33 = vpop.f32.mrf.mxu1 }
 0x144   :  { %v204_v34 = vadd.f32 %v307_v32, %v203_v33 }
 0x146   :  { %207 = vst [vmem:[#allocation2] sm:$0xff] %v204_v34 }
 0x147   :  { %218 = dma.vmem_to_hbm [thread:$0]  %s214_s30, 128, %s216_s3, [#allocation3]  }
 0x14b   :  { %v205_v35 = vpop.f32.mrf.mxu1 }
 0x14c   :  { %332 = dma.done.wait [#allocation3], 128  }
 0x14d   :  { %333 = vsyncadd [#allocation3], 4294967168 }
 0x14e   :  { %223 = vsyncpa [#allocation3], 1 }

</bundles_post_ra>
